<compile_context>
chip_gen: v6e
topology: v6e:2x2x1
jax: 0.10.0
libtpu: 0.0.40
codegen_flags: <defaults>
</compile_context>

<pallas_src>
import jax
import jax.numpy as jnp
from jax.experimental import pallas as pl
from jax.experimental.pallas import tpu as pltpu


def _brain_kernel(x_ref, w1_ref, b1_ref, w2_ref, b2_ref, logits_ref, logp_ref):
    # One batch tile per grid step; weights are the same block every step, so
    # Pallas keeps them resident in VMEM (no re-fetch across iterations).
    x = x_ref[...]                                                 # [TB, D]
    h = jnp.dot(x, w1_ref[...], preferred_element_type=jnp.float32)
    h = jnp.maximum(h + b1_ref[...], 0.0)                          # bias + ReLU (VPU)
    y = jnp.dot(h, w2_ref[...], preferred_element_type=jnp.float32)
    y = y + b2_ref[...]                                            # [TB, A] logits
    logits_ref[...] = y.astype(logits_ref.dtype)

    # Fused policy epilogue: stable log-softmax over actions (exp/log -> EUP).
    m = jnp.max(y, axis=-1, keepdims=True)
    e = jnp.exp(y - m)
    lse = m + jnp.log(jnp.sum(e, axis=-1, keepdims=True))
    logp_ref[...] = (y - lse).astype(logp_ref.dtype)


def brain_forward(x, params, *, return_log_probs=False, block_b=512):
    """Forward pass of Brain.

    Accepts [B, nStateDim] or [nStateDim] input (mirrors the torch
    `unsqueeze(0)` path). Returns logits of shape [B, nActions]; if
    `return_log_probs` is set, also returns fused log-softmax(logits).
    """
    x = jnp.asarray(x, dtype=jnp.float32)
    if x.ndim == 1:
        x = x[None, :]
    w1, b1, w2, b2 = params
    B, D = x.shape
    H = w1.shape[1]
    A = w2.shape[1]

    # Batch tile selection: small batches (per-step inference) run as a single
    # fused tile; large rollout batches grid over rows with a tile that is a
    # multiple of 8 (f32 sublanes), amortizing per-step pipeline overhead.
    if B <= block_b:
        tb = B
        x_pad = x
    else:
        tb = block_b
        bp = pl.cdiv(B, tb) * tb
        x_pad = jnp.pad(x, ((0, bp - B), (0, 0))) if bp != B else x
    bp = x_pad.shape[0]
    grid = (bp // tb,)

    logits, logp = pl.pallas_call(
        _brain_kernel,
        out_shape=(
            jax.ShapeDtypeStruct((bp, A), jnp.float32),
            jax.ShapeDtypeStruct((bp, A), jnp.float32),
        ),
        grid=grid,
        in_specs=[
            pl.BlockSpec((tb, D), lambda i: (i, 0)),   # states: blocked on rows
            pl.BlockSpec((D, H), lambda i: (0, 0)),    # w1: VMEM-resident
            pl.BlockSpec((1, H), lambda i: (0, 0)),    # b1
            pl.BlockSpec((H, A), lambda i: (0, 0)),    # w2
            pl.BlockSpec((1, A), lambda i: (0, 0)),    # b2
        ],
        out_specs=(
            pl.BlockSpec((tb, A), lambda i: (i, 0)),
            pl.BlockSpec((tb, A), lambda i: (i, 0)),
        ),
        compiler_params=pltpu.CompilerParams(
            # Batch axis is embarrassingly parallel -> v7x uses both TCs.
            dimension_semantics=("parallel",),
        ),
    )(x_pad, w1, b1, w2, b2)

    logits = logits[:B]
    if return_log_probs:
        return logits, logp[:B]
    return logits


def init_params(key, n_state_dim, n_actions, hidden=128):
    """Deterministic init matching PyTorch nn.Linear's U(-1/sqrt(fan_in), 1/sqrt(fan_in))."""
    k1, k2, k3, k4 = jax.random.split(key, 4)
    bound1 = 1.0 / jnp.sqrt(jnp.float32(n_state_dim))
    bound2 = 1.0 / jnp.sqrt(jnp.float32(hidden))
    w1 = jax.random.uniform(k1, (n_state_dim, hidden), jnp.float32, -bound1, bound1)
    b1 = jax.random.uniform(k2, (1, hidden), jnp.float32, -bound1, bound1)
    w2 = jax.random.uniform(k3, (hidden, n_actions), jnp.float32, -bound2, bound2)
    b2 = jax.random.uniform(k4, (1, n_actions), jnp.float32, -bound2, bound2)
    return w1, b1, w2, b2


if __name__ == "__main__":
    # CartPole: state dim = 4, actions = 2.
    n_state_dim, n_actions = 4, 2

    key = jax.random.PRNGKey(0)
    pkey, xkey = jax.random.split(key)
    params = init_params(pkey, n_state_dim, n_actions)
    w1, b1, w2, b2 = params

    def ref_forward(xx):
        return jnp.maximum(xx @ w1 + b1, 0.0) @ w2 + b2

    # 1) Small per-step batch (single fused tile path).
    x_small = jax.random.normal(xkey, (8, n_state_dim), dtype=jnp.float32)
    out_small = brain_forward(x_small, params)
    jax.block_until_ready(out_small)
    assert out_small.shape == (8, n_actions)
    assert jnp.allclose(out_small, ref_forward(x_small), atol=1e-5, rtol=1e-5)

    # 2) Single state vector (mirrors torch unsqueeze(0) path).
    out_one = brain_forward(x_small[0], params)
    jax.block_until_ready(out_one)
    assert out_one.shape == (1, n_actions)
    assert jnp.allclose(out_one, ref_forward(x_small[:1]), atol=1e-5, rtol=1e-5)

    # 3) Batched rollout path: grid over the batch (ragged tail -> padding) with
    #    the fused log-softmax epilogue used by the policy-gradient sampler.
    x_big = jax.random.normal(jax.random.PRNGKey(1), (300, n_state_dim), dtype=jnp.float32)
    logits, logp = brain_forward(x_big, params, return_log_probs=True, block_b=128)
    jax.block_until_ready((logits, logp))
    ref_logits = ref_forward(x_big)
    ref_logp = jax.nn.log_softmax(ref_logits, axis=-1)
    assert logits.shape == (300, n_actions)
    assert jnp.allclose(logits, ref_logits, atol=1e-5, rtol=1e-5)
    assert jnp.allclose(logp, ref_logp, atol=1e-5, rtol=1e-5)

    print("KERNEL_OK")
</pallas_src>

<mosaic_0001>
module attributes {stable_mosaic.version = 11 : i64} {
  func.func @_brain_kernel(%arg0: i32, %arg1: memref<8x4xf32, #tpu.memory_space<vmem>>, %arg2: memref<4x128xf32, #tpu.memory_space<vmem>>, %arg3: memref<1x128xf32, #tpu.memory_space<vmem>>, %arg4: memref<128x2xf32, #tpu.memory_space<vmem>>, %arg5: memref<1x2xf32, #tpu.memory_space<vmem>>, %arg6: memref<8x2xf32, #tpu.memory_space<vmem>>, %arg7: memref<8x2xf32, #tpu.memory_space<vmem>>) attributes {dimension_semantics = [#tpu.dimension_semantics<parallel>], iteration_bounds = array<i64: 1>, scalar_prefetch = 0 : i64, scratch_operands = 0 : i64, tpu.core_type = #tpu.core_type<tc>, window_params = [{transform_indices = @transform_0, window_bounds = array<i64: 8, 4>}, {pipeline_mode = #tpu.pipeline_mode<synchronous>, transform_indices = @transform_1, window_bounds = array<i64: 4, 128>}, {pipeline_mode = #tpu.pipeline_mode<synchronous>, transform_indices = @transform_2, window_bounds = array<i64: 1, 128>}, {pipeline_mode = #tpu.pipeline_mode<synchronous>, transform_indices = @transform_3, window_bounds = array<i64: 128, 2>}, {pipeline_mode = #tpu.pipeline_mode<synchronous>, transform_indices = @transform_4, window_bounds = array<i64: 1, 2>}, {transform_indices = @transform_5, window_bounds = array<i64: 8, 2>}, {transform_indices = @transform_6, window_bounds = array<i64: 8, 2>}]} {
    %c0 = arith.constant 0 : index
    %c0_0 = arith.constant 0 : index
    %0 = vector.load %arg1[%c0, %c0_0] : memref<8x4xf32, #tpu.memory_space<vmem>>, vector<8x4xf32>
    %c0_1 = arith.constant 0 : index
    %c0_2 = arith.constant 0 : index
    %1 = vector.load %arg2[%c0_1, %c0_2] : memref<4x128xf32, #tpu.memory_space<vmem>>, vector<4x128xf32>
    %cst = arith.constant dense<0.000000e+00> : vector<8x128xf32>
    %2 = tpu.matmul %0, %1, %cst {dimension_numbers = #tpu.dot_dimension_numbers<[1], [0], [0], [1], [0, 0, 1, 1], [], []>} : vector<8x4xf32>, vector<4x128xf32>, vector<8x128xf32> -> vector<8x128xf32>
    %c0_3 = arith.constant 0 : index
    %c0_4 = arith.constant 0 : index
    %3 = vector.load %arg3[%c0_3, %c0_4] : memref<1x128xf32, #tpu.memory_space<vmem>>, vector<1x128xf32>
    %4 = vector.broadcast %3 : vector<1x128xf32> to vector<8x128xf32>
    %5 = arith.addf %2, %4 : vector<8x128xf32>
    %cst_5 = arith.constant 0.000000e+00 : f32
    %6 = vector.broadcast %cst_5 : f32 to vector<8x128xf32>
    %7 = arith.maximumf %5, %6 : vector<8x128xf32>
    %c0_6 = arith.constant 0 : index
    %c0_7 = arith.constant 0 : index
    %8 = vector.load %arg4[%c0_6, %c0_7] : memref<128x2xf32, #tpu.memory_space<vmem>>, vector<128x2xf32>
    %cst_8 = arith.constant dense<0.000000e+00> : vector<8x2xf32>
    %9 = tpu.matmul %7, %8, %cst_8 {dimension_numbers = #tpu.dot_dimension_numbers<[1], [0], [0], [1], [0, 0, 1, 1], [], []>} : vector<8x128xf32>, vector<128x2xf32>, vector<8x2xf32> -> vector<8x2xf32>
    %c0_9 = arith.constant 0 : index
    %c0_10 = arith.constant 0 : index
    %10 = vector.load %arg5[%c0_9, %c0_10] : memref<1x2xf32, #tpu.memory_space<vmem>>, vector<1x2xf32>
    %11 = vector.broadcast %10 : vector<1x2xf32> to vector<8x2xf32>
    %12 = arith.addf %9, %11 : vector<8x2xf32>
    %c0_11 = arith.constant 0 : index
    %c0_12 = arith.constant 0 : index
    %13 = vector.load %arg6[%c0_11, %c0_12] : memref<8x2xf32, #tpu.memory_space<vmem>>, vector<8x2xf32>
    tpu.vector_store %arg6[%c0_11, %c0_12], %12 {strides = array<i32>} : memref<8x2xf32, #tpu.memory_space<vmem>>, vector<8x2xf32>,
    %cst_13 = arith.constant dense<0xFF800000> : vector<8xf32>
    %14 = vector.multi_reduction <maximumf>, %12, %cst_13 [1] : vector<8x2xf32> to vector<8xf32>
    %15 = vector.shape_cast %14 : vector<8xf32> to vector<8x1xf32>
    %16 = vector.broadcast %15 : vector<8x1xf32> to vector<8x2xf32>
    %17 = arith.subf %12, %16 : vector<8x2xf32>
    %18 = math.exp %17 : vector<8x2xf32>
    %cst_14 = arith.constant dense<0.000000e+00> : vector<8xf32>
    %19 = vector.multi_reduction <add>, %18, %cst_14 [1] : vector<8x2xf32> to vector<8xf32>
    %20 = vector.shape_cast %19 : vector<8xf32> to vector<8x1xf32>
    %21 = math.log %20 : vector<8x1xf32>
    %22 = arith.addf %15, %21 : vector<8x1xf32>
    %23 = vector.broadcast %22 : vector<8x1xf32> to vector<8x2xf32>
    %24 = arith.subf %12, %23 : vector<8x2xf32>
    %c0_15 = arith.constant 0 : index
    %c0_16 = arith.constant 0 : index
    %25 = vector.load %arg7[%c0_15, %c0_16] : memref<8x2xf32, #tpu.memory_space<vmem>>, vector<8x2xf32>
    tpu.vector_store %arg7[%c0_15, %c0_16], %24 {strides = array<i32>} : memref<8x2xf32, #tpu.memory_space<vmem>>, vector<8x2xf32>,
    return
  }
  func.func @transform_0(%arg0: i32) -> (i32, i32) {
    %c0_i32 = arith.constant 0 : i32
    %c0_i32_0 = arith.constant 0 : i32
    return %arg0, %c0_i32 : i32, i32
  }
  func.func @transform_1(%arg0: i32) -> (i32, i32) {
    %c0_i32 = arith.constant 0 : i32
    %c0_i32_0 = arith.constant 0 : i32
    %c0_i32_1 = arith.constant 0 : i32
    return %c0_i32, %c0_i32_0 : i32, i32
  }
  func.func @transform_2(%arg0: i32) -> (i32, i32) {
    %c0_i32 = arith.constant 0 : i32
    %c0_i32_0 = arith.constant 0 : i32
    %c0_i32_1 = arith.constant 0 : i32
    return %c0_i32, %c0_i32_0 : i32, i32
  }
  func.func @transform_3(%arg0: i32) -> (i32, i32) {
    %c0_i32 = arith.constant 0 : i32
    %c0_i32_0 = arith.constant 0 : i32
    %c0_i32_1 = arith.constant 0 : i32
    return %c0_i32, %c0_i32_0 : i32, i32
  }
  func.func @transform_4(%arg0: i32) -> (i32, i32) {
    %c0_i32 = arith.constant 0 : i32
    %c0_i32_0 = arith.constant 0 : i32
    %c0_i32_1 = arith.constant 0 : i32
    return %c0_i32, %c0_i32_0 : i32, i32
  }
  func.func @transform_5(%arg0: i32) -> (i32, i32) {
    %c0_i32 = arith.constant 0 : i32
    %c0_i32_0 = arith.constant 0 : i32
    return %arg0, %c0_i32 : i32, i32
  }
  func.func @transform_6(%arg0: i32) -> (i32, i32) {
    %c0_i32 = arith.constant 0 : i32
    %c0_i32_0 = arith.constant 0 : i32
    return %arg0, %c0_i32 : i32, i32
  }
}

</mosaic_0001>

<bundles_post_ra>
// kernel: tpu_custom_call.1
= control target key start
LH: loop header
LB: loop body
LE: loop exit
PB: predicated region body
PF: predicated region fallthrough
CT: control target
= control target key end

     0   :  { %vm35_vm0 = vcmask 1043456   ;;  %vm31_vm1 = vcmask 31744   ;;  %v296_v0 = vmov 0.0   ;;  %vm297_vm2 = vmmov 0   ;;  %s403_s1 = inlined_call_operand.vmem [shape: f32[4,128], index: 1, kind: input, shape index: {}]   ;;  %s404_s0 = inlined_call_operand.vmem [shape: f32[8,4], index: 0, kind: input, shape index: {}]   ;;  %s405_s3 = inlined_call_operand.vmem [shape: f32[128,2], index: 3, kind: input, shape index: {}]   ;;  %s406_s2 = inlined_call_operand.vmem [shape: f32[1,128], index: 2, kind: input, shape index: {}]   ;;  %s407_s4 = inlined_call_operand.vmem [shape: f32[1,2], index: 4, kind: input, shape index: {}]   ;;  %s408_s5 = inlined_call_operand.vmem [shape: f32[8,2], index: 5, kind: output, shape index: {0}]   ;;  %s409_s6 = inlined_call_operand.vmem [shape: f32[8,2], index: 6, kind: output, shape index: {1}]  }
   0x1   :  { %250 = vmatprep.subr.mxu0 %v296_v0  ;;  %v23_v1 = vld [vmem:[%s403_s1] sm:$0xf]  ;;  %252 = vmatprep.mubr.msk.f32.mxu0 %vm297_vm2, %v296_v0  ;;  %v125_v3 = vld [vmem:[%s405_s3 + $0x78] sm:$0xff]  ;;  %v124_v4 = vld [vmem:[%s405_s3 + $0x70] sm:$0xff]  ;;  %vm203_vm3 = vcmask 15360  }
   0x2   :  { %v22_v2 = vld [vmem:[%s404_s0] sm:$0xff]  ;;  %251 = vmatpush3.msk.msra.mxu0 %vm35_vm0, %v23_v1  ;;  %255 = vmatprep.subr.mxu1 %v296_v0  ;;  %v123_v5 = vld [vmem:[%s405_s3 + $0x68] sm:$0xff]  ;;  %v121_v7 = vld [vmem:[%s405_s3 + $0x58] sm:$0xff] }
   0x3   :  { %253 = vmatmul.mubr.msk.f32.vlgmr.msra.gmra.mxu0 %vm31_vm1, %v22_v2  ;;  %256 = vmatpush3.msra.mxu1 %v125_v3  ;;  %v122_v6 = vld [vmem:[%s405_s3 + $0x60] sm:$0xff]  ;;  %v120_v8 = vld [vmem:[%s405_s3 + $0x50] sm:$0xff]  ;;  %v119_v9 = vld [vmem:[%s405_s3 + $0x48] sm:$0xff] }
   0x4   :  { %257 = vmatprep.subr.mxu1 %v296_v0  ;;  %287 = vmatprep.mubr.msk.f32.mxu1 %vm297_vm2, %v296_v0  ;;  %v118_v10 = vld [vmem:[%s405_s3 + $0x40] sm:$0xff]  ;;  %v117_v11 = vld [vmem:[%s405_s3 + $0x38] sm:$0xff]  ;;  %v116_v12 = vld [vmem:[%s405_s3 + $0x30] sm:$0xff] }
   0x5   :  { %258 = vmatpush3.msra.mxu1 %v124_v4  ;;  %v115_v13 = vld [vmem:[%s405_s3 + $0x28] sm:$0xff]  ;;  %v114_v14 = vld [vmem:[%s405_s3 + $0x20] sm:$0xff]  ;;  %v113_v15 = vld [vmem:[%s405_s3 + $0x18] sm:$0xff] }
   0x6   :  { %259 = vmatprep.subr.mxu1 %v296_v0  ;;  %v112_v16 = vld [vmem:[%s405_s3 + $0x10] sm:$0xff]  ;;  %v111_v17 = vld [vmem:[%s405_s3 + $0x8] sm:$0xff]  ;;  %v110_v18 = vld [vmem:[%s405_s3] sm:$0xff] }
   0x7   :  { %260 = vmatpush3.msra.mxu1 %v123_v5  ;;  %v227_v19 = vld [vmem:[%s406_s2] ss:$0 sm:$0xff] }
   0x8   :  { %261 = vmatprep.subr.mxu1 %v296_v0  ;;  %v230_v24 = vld [vmem:[%s407_s4] ss:$0 sm:$0xff] }
   0x9   :  { %262 = vmatpush3.msra.mxu1 %v122_v6 }
   0xa   :  { %263 = vmatprep.subr.mxu1 %v296_v0 }
   0xb   :  { %264 = vmatpush3.msra.mxu1 %v121_v7 }
   0xc   :  { %265 = vmatprep.subr.mxu1 %v296_v0 }
   0xd   :  { %266 = vmatpush3.msra.mxu1 %v120_v8 }
   0xe   :  { %267 = vmatprep.subr.mxu1 %v296_v0 }
   0xf   :  { %268 = vmatpush3.msra.mxu1 %v119_v9 }
  0x10   :  { %269 = vmatprep.subr.mxu1 %v296_v0 }
  0x11   :  { %270 = vmatpush3.msra.mxu1 %v118_v10 }
  0x12   :  { %271 = vmatprep.subr.mxu1 %v296_v0 }
  0x13   :  { %272 = vmatpush3.msra.mxu1 %v117_v11 }
  0x14   :  { %273 = vmatprep.subr.mxu1 %v296_v0 }
  0x15   :  { %274 = vmatpush3.msra.mxu1 %v116_v12 }
  0x16   :  { %275 = vmatprep.subr.mxu1 %v296_v0 }
  0x17   :  { %276 = vmatpush3.msra.mxu1 %v115_v13 }
  0x18   :  { %277 = vmatprep.subr.mxu1 %v296_v0 }
  0x19   :  { %278 = vmatpush3.msra.mxu1 %v114_v14 }
  0x1a   :  { %279 = vmatprep.subr.mxu1 %v296_v0 }
  0x1b   :  { %280 = vmatpush3.msra.mxu1 %v113_v15 }
  0x1c   :  { %281 = vmatprep.subr.mxu1 %v296_v0 }
  0x1d   :  { %282 = vmatpush3.msra.mxu1 %v112_v16 }
  0x1e   :  { %283 = vmatprep.subr.mxu1 %v296_v0 }
  0x1f   :  { %284 = vmatpush3.msra.mxu1 %v111_v17 }
  0x20   :  { %285 = vmatprep.subr.mxu1 %v296_v0 }
  0x21   :  { %286 = vmatpush3.msra.mxu1 %v110_v18 }
  0xc3   :  { %v105_v20 = vpop.f32.mrf.mxu0 }
  0xc4   :  { %v106_v21 = vadd.f32 %v227_v19, %v105_v20 }
  0xc5   :  { %v254_v22 = vpop.f32.mrf.mxu0 }
  0xc6   :  { %v109_v23 = vmax.f32 %v106_v21, 0.0 }
  0xc8   :  { %288 = vmatmul.mubr.f32.vlgmr.msra.gmra.mxu1 %v109_v23 }
 0x188   :  { %v199_v25 = vpop.f32.mrf.mxu1 }
 0x189   :  { %v200_v26 = vadd.f32 %v230_v24, %v199_v25 }
 0x18a   :  { %v289_v27 = vpop.f32.mrf.mxu1 }
 0x18b   :  { %v205_v28 = vsel %vm203_vm3, %v200_v26, -inf  ;;  %204 = vst.msk [vmem:[%s408_s5] sm:$0xff] %vm203_vm3, %v200_v26 }
 0x18c   :  { %206 = vmax.xlane.f32.xlu0 %v205_v28 }
 0x215   :  { %v207_v29 = vpop.xlane.xlu0 %206 }
 0x216   :  { %v208_v30 = vsub.f32 %v200_v26, %v207_v29 }
 0x218   :  { %v209_v31 = vmul.f32 1.442695, %v208_v30 }
 0x21a   :  { %292 = vpow2.f32 %v209_v31 }
 0x227   :  { %v293_v32 = vpop.eup %292 }
 0x228   :  { %v211_v33 = vsel %vm203_vm3, %v293_v32, 0.0 }
 0x229   :  { %212 = vadd.xlane.f32.xlu0 %v211_v33 }
 0x2b2   :  { %v213_v34 = vpop.xlane.xlu0 %212 }
 0x2b3   :  { %294 = vlog2.f32 %v213_v34 }
 0x2c0   :  { %v295_v35 = vpop.eup %294 }
 0x2c1   :  { %v215_v36 = vmul.f32 0.6931472, %v295_v35 }
 0x2c3   :  { %v216_v37 = vadd.f32 %v215_v36, %v207_v29 }
 0x2c5   :  { %v217_v38 = vsub.f32 %v200_v26, %v216_v37 }
 0x2c7   :  { %218 = vst.msk [vmem:[%s409_s6] sm:$0xff] %vm203_vm3, %v217_v38 }

</bundles_post_ra>
